<compile_context>
chip_gen: v5e
topology: v5e:2x2
jax: 0.10.0
libtpu: 0.0.40
codegen_flags: <defaults>
</compile_context>

<pallas_src>
import functools

import jax
import jax.numpy as jnp
import numpy as np
from jax.experimental import pallas as pl
from jax.experimental.pallas import tpu as pltpu

EPS = 1e-5
LANE = 128
SUBLANE = 8
DEFAULT_TM = 1024  # safe on v5e/v6e/v7x VMEM budgets for CTGAN-scale dims


def _round_up(n, m):
    return ((n + m - 1) // m) * m


def _gn1_relu(y, gamma, beta, inv_c):
    """GroupNorm(num_groups=1) over the feature axis of [TM, Cp] + ReLU.

    `y`'s padded columns are exactly zero; stats divide by the *real* width via
    `inv_c`.  gamma/beta are zero in padded columns so padded outputs stay 0.
    One-pass moments; gamma folded into the rsqrt scale.  All math in f32.
    """
    s = jnp.sum(y, axis=1, keepdims=True)
    ss = jnp.sum(y * y, axis=1, keepdims=True)
    mean = s * inv_c
    var = jnp.maximum(ss * inv_c - mean * mean, 0.0)  # biased var, like torch
    scale = gamma * jax.lax.rsqrt(var + EPS)          # [1,Cp] * [TM,1] -> [TM,Cp]
    return jnp.maximum(y * scale + (beta - mean * scale), 0.0)


def generator_kernel(
    x_ref,                      # (TM, E)               bf16
    wx_ref,                     # (E, H1p+H2p+Dp)       bf16  == [w1 | w2_x | w3_x] (padded)
    w2o_ref,                    # (H1p, H2p)            bf16
    w3o2_ref,                   # (H2p, Dp)             bf16
    w3o1_ref,                   # (H1p, Dp)             bf16
    b1_ref, g1_ref, be1_ref,    # (1, H1p)              f32
    b2_ref, g2_ref, be2_ref,    # (1, H2p)              f32
    b3_ref,                     # (1, Dp)               f32
    o_ref,                      # (TM, Dp)              f32
    *, h1, h2, h1p, h2p,
):
    x = x_ref[...]

    # One fused MXU pass for every x-path contribution; lane-aligned slices.
    xz = jnp.dot(x, wx_ref[...], preferred_element_type=jnp.float32)
    xz1 = xz[:, :h1p]
    xz2 = xz[:, h1p:h1p + h2p]
    xz3 = xz[:, h1p + h2p:]

    # Residual block 1: Linear(E -> H1) + GroupNorm(1, H1) + ReLU.
    y1 = xz1 + b1_ref[...]
    out1 = _gn1_relu(y1, g1_ref[...], be1_ref[...], 1.0 / h1)
    out1_bf = out1.astype(jnp.bfloat16)

    # Residual block 2: cat([out1, x]) @ W2 == out1 @ W2[:H1] + x @ W2[H1:].
    y2 = (jnp.dot(out1_bf, w2o_ref[...], preferred_element_type=jnp.float32)
          + xz2 + b2_ref[...])
    out2 = _gn1_relu(y2, g2_ref[...], be2_ref[...], 1.0 / h2)
    out2_bf = out2.astype(jnp.bfloat16)

    # Final Linear: cat([out2, out1, x]) @ W3 split along the input dim.
    o_ref[...] = (jnp.dot(out2_bf, w3o2_ref[...], preferred_element_type=jnp.float32)
                  + jnp.dot(out1_bf, w3o1_ref[...], preferred_element_type=jnp.float32)
                  + xz3 + b3_ref[...])


def generator_forward(x, params, tm=DEFAULT_TM):
    """x: [N, E] float32 -> [N, D] float32, one fused, batch-tiled pallas_call."""
    n, e = x.shape
    h1, h2 = params["h1"], params["h2"]
    d = params["data_dim"]
    h1p = params["b1"].shape[-1]
    h2p = params["b2"].shape[-1]
    dp = params["b3_pad"].shape[-1]

    tm_eff = min(tm, _round_up(n, SUBLANE))
    n_pad = _round_up(n, tm_eff)
    x_bf = x.astype(jnp.bfloat16)  # halves HBM traffic for the x tiles
    if n_pad != n:
        x_bf = jnp.pad(x_bf, ((0, n_pad - n), (0, 0)))

    weight_args = (
        params["wx_cat"], params["w2_out"], params["w3_out2"], params["w3_out1"],
        params["b1"], params["g1"], params["be1"],
        params["b2"], params["g2"], params["be2"],
        params["b3_pad"],
    )
    const = lambda i: (0, 0)  # weights stay resident across grid steps (no re-DMA)
    in_specs = [pl.BlockSpec((tm_eff, e), lambda i: (i, 0))]
    in_specs += [pl.BlockSpec(w.shape, const) for w in weight_args]

    out_pad = pl.pallas_call(
        functools.partial(generator_kernel, h1=h1, h2=h2, h1p=h1p, h2p=h2p),
        out_shape=jax.ShapeDtypeStruct((n_pad, dp), jnp.float32),
        grid=(n_pad // tm_eff,),
        in_specs=in_specs,
        out_specs=pl.BlockSpec((tm_eff, dp), lambda i: (i, 0)),
        compiler_params=pltpu.CompilerParams(
            dimension_semantics=("parallel",)),
    )(x_bf, *weight_args)

    return out_pad[:n, :d]


def init_params(key, embedding_dim, data_dim, gen_dims):
    """Deterministic synthetic parameters + pre-packed (lane-padded) kernel weights."""
    e = embedding_dim
    h1, h2 = gen_dims
    h1p = _round_up(h1, LANE)
    h2p = _round_up(h2, LANE)
    dp = _round_up(data_dim, LANE)
    keys = jax.random.split(key, 10)
    scale = 0.1

    w1 = scale * jax.random.normal(keys[0], (e, h1), jnp.float32)
    b1 = scale * jax.random.normal(keys[1], (1, h1), jnp.float32)
    g1 = 1.0 + 0.05 * jax.random.normal(keys[2], (1, h1), jnp.float32)
    be1 = 0.05 * jax.random.normal(keys[3], (1, h1), jnp.float32)

    w2 = scale * jax.random.normal(keys[4], (h1 + e, h2), jnp.float32)  # input = cat([out1, x])
    b2 = scale * jax.random.normal(keys[5], (1, h2), jnp.float32)
    g2 = 1.0 + 0.05 * jax.random.normal(keys[6], (1, h2), jnp.float32)
    be2 = 0.05 * jax.random.normal(keys[7], (1, h2), jnp.float32)

    w3 = scale * jax.random.normal(keys[8], (h2 + h1 + e, data_dim), jnp.float32)  # cat([out2, out1, x])
    b3 = scale * jax.random.normal(keys[9], (1, data_dim), jnp.float32)

    # Split along the concat (input) dims.
    w2_out, w2_x = w2[:h1], w2[h1:]
    w3_out2, w3_out1, w3_x = w3[:h2], w3[h2:h2 + h1], w3[h2 + h1:]

    # Lane-pad every feature dim with zeros (padded lanes stay exactly 0 through
    # the whole network because gamma/beta/bias are zero-padded too).
    p1, p2, p3 = h1p - h1, h2p - h2, dp - data_dim
    w1_p = jnp.pad(w1, ((0, 0), (0, p1)))
    w2x_p = jnp.pad(w2_x, ((0, 0), (0, p2)))
    w3x_p = jnp.pad(w3_x, ((0, 0), (0, p3)))
    w2o_p = jnp.pad(w2_out, ((0, p1), (0, p2)))
    w3o2_p = jnp.pad(w3_out2, ((0, p2), (0, p3)))
    w3o1_p = jnp.pad(w3_out1, ((0, p1), (0, p3)))

    b1_p = jnp.pad(b1, ((0, 0), (0, p1)))
    g1_p = jnp.pad(g1, ((0, 0), (0, p1)))
    be1_p = jnp.pad(be1, ((0, 0), (0, p1)))
    b2_p = jnp.pad(b2, ((0, 0), (0, p2)))
    g2_p = jnp.pad(g2, ((0, 0), (0, p2)))
    be2_p = jnp.pad(be2, ((0, 0), (0, p2)))
    b3_p = jnp.pad(b3, ((0, 0), (0, p3)))

    wx_cat = jnp.concatenate([w1_p, w2x_p, w3x_p], axis=1)  # [E, H1p+H2p+Dp]

    return {
        "data_dim": data_dim, "h1": h1, "h2": h2,
        # packed kernel params (MXU operands in bf16, bias/affine in f32)
        "wx_cat": wx_cat.astype(jnp.bfloat16),
        "w2_out": w2o_p.astype(jnp.bfloat16),
        "w3_out2": w3o2_p.astype(jnp.bfloat16),
        "w3_out1": w3o1_p.astype(jnp.bfloat16),
        "b1": b1_p, "g1": g1_p, "be1": be1_p,
        "b2": b2_p, "g2": g2_p, "be2": be2_p,
        "b3_pad": b3_p,
        # full-precision originals for the pure-JAX reference
        "_w1": w1, "_b1": b1, "_g1": g1, "_be1": be1,
        "_w2": w2, "_b2": b2, "_g2": g2, "_be2": be2,
        "_w3": w3, "_b3": b3,
    }


def reference_forward(x, params):
    """Pure-JAX (f32) mirror of the PyTorch Generator forward, with explicit concats."""
    def residual(h, w, b, gamma, beta):
        y = h @ w + b
        mean = jnp.mean(y, axis=1, keepdims=True)
        var = jnp.mean((y - mean) ** 2, axis=1, keepdims=True)
        yh = (y - mean) * jax.lax.rsqrt(var + EPS)
        out = jnp.maximum(yh * gamma + beta, 0.0)
        return jnp.concatenate([out, h], axis=1)

    h = residual(x, params["_w1"], params["_b1"], params["_g1"], params["_be1"])
    h = residual(h, params["_w2"], params["_b2"], params["_g2"], params["_be2"])
    return h @ params["_w3"] + params["_b3"]


if __name__ == "__main__":
    # Small shapes consistent with the module: batch=8, embedding_dim=32,
    # gen_dims=(64, 64), data_dim=16.
    N, E, D = 8, 32, 16
    gen_dims = (64, 64)

    key = jax.random.PRNGKey(0)
    kx, kp = jax.random.split(key)
    x = jax.random.normal(kx, (N, E), jnp.float32)
    params = init_params(kp, E, D, gen_dims)

    out = jax.block_until_ready(generator_forward(x, params))
    ref = jax.block_until_ready(reference_forward(x, params))

    assert out.shape == (N, D)
    # bf16 MXU matmuls (f32 accumulation) vs. the pure-f32 reference.
    np.testing.assert_allclose(np.asarray(out), np.asarray(ref), rtol=3e-2, atol=3e-2)

    print("KERNEL_OK")
</pallas_src>

<mosaic_0001>
module attributes {stable_mosaic.version = 11 : i64} {
  func.func @generator_kernel(%arg0: i32, %arg1: memref<8x32xbf16, #tpu.memory_space<vmem>>, %arg2: memref<32x384xbf16, #tpu.memory_space<vmem>>, %arg3: memref<128x128xbf16, #tpu.memory_space<vmem>>, %arg4: memref<128x128xbf16, #tpu.memory_space<vmem>>, %arg5: memref<128x128xbf16, #tpu.memory_space<vmem>>, %arg6: memref<1x128xf32, #tpu.memory_space<vmem>>, %arg7: memref<1x128xf32, #tpu.memory_space<vmem>>, %arg8: memref<1x128xf32, #tpu.memory_space<vmem>>, %arg9: memref<1x128xf32, #tpu.memory_space<vmem>>, %arg10: memref<1x128xf32, #tpu.memory_space<vmem>>, %arg11: memref<1x128xf32, #tpu.memory_space<vmem>>, %arg12: memref<1x128xf32, #tpu.memory_space<vmem>>, %arg13: memref<8x128xf32, #tpu.memory_space<vmem>>) attributes {dimension_semantics = [#tpu.dimension_semantics<parallel>], iteration_bounds = array<i64: 1>, scalar_prefetch = 0 : i64, scratch_operands = 0 : i64, tpu.core_type = #tpu.core_type<tc>, window_params = [{transform_indices = @transform_0, window_bounds = array<i64: 8, 32>}, {pipeline_mode = #tpu.pipeline_mode<synchronous>, transform_indices = @transform_1, window_bounds = array<i64: 32, 384>}, {pipeline_mode = #tpu.pipeline_mode<synchronous>, transform_indices = @transform_2, window_bounds = array<i64: 128, 128>}, {pipeline_mode = #tpu.pipeline_mode<synchronous>, transform_indices = @transform_3, window_bounds = array<i64: 128, 128>}, {pipeline_mode = #tpu.pipeline_mode<synchronous>, transform_indices = @transform_4, window_bounds = array<i64: 128, 128>}, {pipeline_mode = #tpu.pipeline_mode<synchronous>, transform_indices = @transform_5, window_bounds = array<i64: 1, 128>}, {pipeline_mode = #tpu.pipeline_mode<synchronous>, transform_indices = @transform_6, window_bounds = array<i64: 1, 128>}, {pipeline_mode = #tpu.pipeline_mode<synchronous>, transform_indices = @transform_7, window_bounds = array<i64: 1, 128>}, {pipeline_mode = #tpu.pipeline_mode<synchronous>, transform_indices = @transform_8, window_bounds = array<i64: 1, 128>}, {pipeline_mode = #tpu.pipeline_mode<synchronous>, transform_indices = @transform_9, window_bounds = array<i64: 1, 128>}, {pipeline_mode = #tpu.pipeline_mode<synchronous>, transform_indices = @transform_10, window_bounds = array<i64: 1, 128>}, {pipeline_mode = #tpu.pipeline_mode<synchronous>, transform_indices = @transform_11, window_bounds = array<i64: 1, 128>}, {transform_indices = @transform_12, window_bounds = array<i64: 8, 128>}]} {
    %c0 = arith.constant 0 : index
    %c0_0 = arith.constant 0 : index
    %0 = vector.load %arg1[%c0, %c0_0] : memref<8x32xbf16, #tpu.memory_space<vmem>>, vector<8x32xbf16>
    %c0_1 = arith.constant 0 : index
    %c0_2 = arith.constant 0 : index
    %1 = vector.load %arg2[%c0_1, %c0_2] : memref<32x384xbf16, #tpu.memory_space<vmem>>, vector<32x384xbf16>
    %cst = arith.constant dense<0.000000e+00> : vector<8x384xf32>
    %2 = tpu.matmul %0, %1, %cst {dimension_numbers = #tpu.dot_dimension_numbers<[1], [0], [0], [1], [0, 0, 1, 1], [], []>} : vector<8x32xbf16>, vector<32x384xbf16>, vector<8x384xf32> -> vector<8x384xf32>
    %3 = vector.extract_strided_slice %2 {offsets = [0, 0], sizes = [8, 128], strides = [1, 1]} : vector<8x384xf32> to vector<8x128xf32>
    %4 = vector.extract_strided_slice %2 {offsets = [0, 128], sizes = [8, 128], strides = [1, 1]} : vector<8x384xf32> to vector<8x128xf32>
    %5 = vector.extract_strided_slice %2 {offsets = [0, 256], sizes = [8, 128], strides = [1, 1]} : vector<8x384xf32> to vector<8x128xf32>
    %c0_3 = arith.constant 0 : index
    %c0_4 = arith.constant 0 : index
    %6 = vector.load %arg6[%c0_3, %c0_4] : memref<1x128xf32, #tpu.memory_space<vmem>>, vector<1x128xf32>
    %7 = vector.broadcast %6 : vector<1x128xf32> to vector<8x128xf32>
    %8 = arith.addf %3, %7 : vector<8x128xf32>
    %c0_5 = arith.constant 0 : index
    %c0_6 = arith.constant 0 : index
    %9 = vector.load %arg7[%c0_5, %c0_6] : memref<1x128xf32, #tpu.memory_space<vmem>>, vector<1x128xf32>
    %c0_7 = arith.constant 0 : index
    %c0_8 = arith.constant 0 : index
    %10 = vector.load %arg8[%c0_7, %c0_8] : memref<1x128xf32, #tpu.memory_space<vmem>>, vector<1x128xf32>
    %cst_9 = arith.constant dense<0.000000e+00> : vector<8xf32>
    %11 = vector.multi_reduction <add>, %8, %cst_9 [1] : vector<8x128xf32> to vector<8xf32>
    %12 = vector.shape_cast %11 : vector<8xf32> to vector<8x1xf32>
    %13 = arith.mulf %8, %8 : vector<8x128xf32>
    %cst_10 = arith.constant dense<0.000000e+00> : vector<8xf32>
    %14 = vector.multi_reduction <add>, %13, %cst_10 [1] : vector<8x128xf32> to vector<8xf32>
    %15 = vector.shape_cast %14 : vector<8xf32> to vector<8x1xf32>
    %cst_11 = arith.constant 1.562500e-02 : f32
    %16 = vector.broadcast %cst_11 : f32 to vector<8x1xf32>
    %17 = arith.mulf %12, %16 : vector<8x1xf32>
    %cst_12 = arith.constant 1.562500e-02 : f32
    %18 = vector.broadcast %cst_12 : f32 to vector<8x1xf32>
    %19 = arith.mulf %15, %18 : vector<8x1xf32>
    %20 = arith.mulf %17, %17 : vector<8x1xf32>
    %21 = arith.subf %19, %20 : vector<8x1xf32>
    %cst_13 = arith.constant 0.000000e+00 : f32
    %22 = vector.broadcast %cst_13 : f32 to vector<8x1xf32>
    %23 = arith.maximumf %21, %22 : vector<8x1xf32>
    %cst_14 = arith.constant 9.99999974E-6 : f32
    %24 = vector.broadcast %cst_14 : f32 to vector<8x1xf32>
    %25 = arith.addf %23, %24 : vector<8x1xf32>
    %26 = math.rsqrt %25 : vector<8x1xf32>
    %27 = vector.broadcast %9 : vector<1x128xf32> to vector<8x128xf32>
    %28 = vector.broadcast %26 : vector<8x1xf32> to vector<8x128xf32>
    %29 = arith.mulf %27, %28 : vector<8x128xf32>
    %30 = arith.mulf %8, %29 : vector<8x128xf32>
    %31 = vector.broadcast %17 : vector<8x1xf32> to vector<8x128xf32>
    %32 = arith.mulf %31, %29 : vector<8x128xf32>
    %33 = vector.broadcast %10 : vector<1x128xf32> to vector<8x128xf32>
    %34 = arith.subf %33, %32 : vector<8x128xf32>
    %35 = arith.addf %30, %34 : vector<8x128xf32>
    %cst_15 = arith.constant 0.000000e+00 : f32
    %36 = vector.broadcast %cst_15 : f32 to vector<8x128xf32>
    %37 = arith.maximumf %35, %36 : vector<8x128xf32>
    %38 = arith.truncf %37 : vector<8x128xf32> to vector<8x128xbf16>
    %c0_16 = arith.constant 0 : index
    %c0_17 = arith.constant 0 : index
    %39 = vector.load %arg3[%c0_16, %c0_17] : memref<128x128xbf16, #tpu.memory_space<vmem>>, vector<128x128xbf16>
    %cst_18 = arith.constant dense<0.000000e+00> : vector<8x128xf32>
    %40 = tpu.matmul %38, %39, %cst_18 {dimension_numbers = #tpu.dot_dimension_numbers<[1], [0], [0], [1], [0, 0, 1, 1], [], []>} : vector<8x128xbf16>, vector<128x128xbf16>, vector<8x128xf32> -> vector<8x128xf32>
    %41 = arith.addf %40, %4 : vector<8x128xf32>
    %c0_19 = arith.constant 0 : index
    %c0_20 = arith.constant 0 : index
    %42 = vector.load %arg9[%c0_19, %c0_20] : memref<1x128xf32, #tpu.memory_space<vmem>>, vector<1x128xf32>
    %43 = vector.broadcast %42 : vector<1x128xf32> to vector<8x128xf32>
    %44 = arith.addf %41, %43 : vector<8x128xf32>
    %c0_21 = arith.constant 0 : index
    %c0_22 = arith.constant 0 : index
    %45 = vector.load %arg10[%c0_21, %c0_22] : memref<1x128xf32, #tpu.memory_space<vmem>>, vector<1x128xf32>
    %c0_23 = arith.constant 0 : index
    %c0_24 = arith.constant 0 : index
    %46 = vector.load %arg11[%c0_23, %c0_24] : memref<1x128xf32, #tpu.memory_space<vmem>>, vector<1x128xf32>
    %cst_25 = arith.constant dense<0.000000e+00> : vector<8xf32>
    %47 = vector.multi_reduction <add>, %44, %cst_25 [1] : vector<8x128xf32> to vector<8xf32>
    %48 = vector.shape_cast %47 : vector<8xf32> to vector<8x1xf32>
    %49 = arith.mulf %44, %44 : vector<8x128xf32>
    %cst_26 = arith.constant dense<0.000000e+00> : vector<8xf32>
    %50 = vector.multi_reduction <add>, %49, %cst_26 [1] : vector<8x128xf32> to vector<8xf32>
    %51 = vector.shape_cast %50 : vector<8xf32> to vector<8x1xf32>
    %cst_27 = arith.constant 1.562500e-02 : f32
    %52 = vector.broadcast %cst_27 : f32 to vector<8x1xf32>
    %53 = arith.mulf %48, %52 : vector<8x1xf32>
    %cst_28 = arith.constant 1.562500e-02 : f32
    %54 = vector.broadcast %cst_28 : f32 to vector<8x1xf32>
    %55 = arith.mulf %51, %54 : vector<8x1xf32>
    %56 = arith.mulf %53, %53 : vector<8x1xf32>
    %57 = arith.subf %55, %56 : vector<8x1xf32>
    %cst_29 = arith.constant 0.000000e+00 : f32
    %58 = vector.broadcast %cst_29 : f32 to vector<8x1xf32>
    %59 = arith.maximumf %57, %58 : vector<8x1xf32>
    %cst_30 = arith.constant 9.99999974E-6 : f32
    %60 = vector.broadcast %cst_30 : f32 to vector<8x1xf32>
    %61 = arith.addf %59, %60 : vector<8x1xf32>
    %62 = math.rsqrt %61 : vector<8x1xf32>
    %63 = vector.broadcast %45 : vector<1x128xf32> to vector<8x128xf32>
    %64 = vector.broadcast %62 : vector<8x1xf32> to vector<8x128xf32>
    %65 = arith.mulf %63, %64 : vector<8x128xf32>
    %66 = arith.mulf %44, %65 : vector<8x128xf32>
    %67 = vector.broadcast %53 : vector<8x1xf32> to vector<8x128xf32>
    %68 = arith.mulf %67, %65 : vector<8x128xf32>
    %69 = vector.broadcast %46 : vector<1x128xf32> to vector<8x128xf32>
    %70 = arith.subf %69, %68 : vector<8x128xf32>
    %71 = arith.addf %66, %70 : vector<8x128xf32>
    %cst_31 = arith.constant 0.000000e+00 : f32
    %72 = vector.broadcast %cst_31 : f32 to vector<8x128xf32>
    %73 = arith.maximumf %71, %72 : vector<8x128xf32>
    %74 = arith.truncf %73 : vector<8x128xf32> to vector<8x128xbf16>
    %c0_32 = arith.constant 0 : index
    %c0_33 = arith.constant 0 : index
    %75 = vector.load %arg4[%c0_32, %c0_33] : memref<128x128xbf16, #tpu.memory_space<vmem>>, vector<128x128xbf16>
    %cst_34 = arith.constant dense<0.000000e+00> : vector<8x128xf32>
    %76 = tpu.matmul %74, %75, %cst_34 {dimension_numbers = #tpu.dot_dimension_numbers<[1], [0], [0], [1], [0, 0, 1, 1], [], []>} : vector<8x128xbf16>, vector<128x128xbf16>, vector<8x128xf32> -> vector<8x128xf32>
    %c0_35 = arith.constant 0 : index
    %c0_36 = arith.constant 0 : index
    %77 = vector.load %arg5[%c0_35, %c0_36] : memref<128x128xbf16, #tpu.memory_space<vmem>>, vector<128x128xbf16>
    %cst_37 = arith.constant dense<0.000000e+00> : vector<8x128xf32>
    %78 = tpu.matmul %38, %77, %cst_37 {dimension_numbers = #tpu.dot_dimension_numbers<[1], [0], [0], [1], [0, 0, 1, 1], [], []>} : vector<8x128xbf16>, vector<128x128xbf16>, vector<8x128xf32> -> vector<8x128xf32>
    %79 = arith.addf %76, %78 : vector<8x128xf32>
    %80 = arith.addf %79, %5 : vector<8x128xf32>
    %c0_38 = arith.constant 0 : index
    %c0_39 = arith.constant 0 : index
    %81 = vector.load %arg12[%c0_38, %c0_39] : memref<1x128xf32, #tpu.memory_space<vmem>>, vector<1x128xf32>
    %82 = vector.broadcast %81 : vector<1x128xf32> to vector<8x128xf32>
    %83 = arith.addf %80, %82 : vector<8x128xf32>
    %c0_40 = arith.constant 0 : index
    %c0_41 = arith.constant 0 : index
    %84 = vector.load %arg13[%c0_40, %c0_41] : memref<8x128xf32, #tpu.memory_space<vmem>>, vector<8x128xf32>
    tpu.vector_store %arg13[%c0_40, %c0_41], %83 {strides = array<i32>} : memref<8x128xf32, #tpu.memory_space<vmem>>, vector<8x128xf32>,
    return
  }
  func.func @transform_0(%arg0: i32) -> (i32, i32) {
    %c0_i32 = arith.constant 0 : i32
    %c0_i32_0 = arith.constant 0 : i32
    return %arg0, %c0_i32 : i32, i32
  }
  func.func @transform_1(%arg0: i32) -> (i32, i32) {
    %c0_i32 = arith.constant 0 : i32
    %c0_i32_0 = arith.constant 0 : i32
    %c0_i32_1 = arith.constant 0 : i32
    return %c0_i32, %c0_i32_0 : i32, i32
  }
  func.func @transform_2(%arg0: i32) -> (i32, i32) {
    %c0_i32 = arith.constant 0 : i32
    %c0_i32_0 = arith.constant 0 : i32
    %c0_i32_1 = arith.constant 0 : i32
    return %c0_i32, %c0_i32_0 : i32, i32
  }
  func.func @transform_3(%arg0: i32) -> (i32, i32) {
    %c0_i32 = arith.constant 0 : i32
    %c0_i32_0 = arith.constant 0 : i32
    %c0_i32_1 = arith.constant 0 : i32
    return %c0_i32, %c0_i32_0 : i32, i32
  }
  func.func @transform_4(%arg0: i32) -> (i32, i32) {
    %c0_i32 = arith.constant 0 : i32
    %c0_i32_0 = arith.constant 0 : i32
    %c0_i32_1 = arith.constant 0 : i32
    return %c0_i32, %c0_i32_0 : i32, i32
  }
  func.func @transform_5(%arg0: i32) -> (i32, i32) {
    %c0_i32 = arith.constant 0 : i32
    %c0_i32_0 = arith.constant 0 : i32
    %c0_i32_1 = arith.constant 0 : i32
    return %c0_i32, %c0_i32_0 : i32, i32
  }
  func.func @transform_6(%arg0: i32) -> (i32, i32) {
    %c0_i32 = arith.constant 0 : i32
    %c0_i32_0 = arith.constant 0 : i32
    %c0_i32_1 = arith.constant 0 : i32
    return %c0_i32, %c0_i32_0 : i32, i32
  }
  func.func @transform_7(%arg0: i32) -> (i32, i32) {
    %c0_i32 = arith.constant 0 : i32
    %c0_i32_0 = arith.constant 0 : i32
    %c0_i32_1 = arith.constant 0 : i32
    return %c0_i32, %c0_i32_0 : i32, i32
  }
  func.func @transform_8(%arg0: i32) -> (i32, i32) {
    %c0_i32 = arith.constant 0 : i32
    %c0_i32_0 = arith.constant 0 : i32
    %c0_i32_1 = arith.constant 0 : i32
    return %c0_i32, %c0_i32_0 : i32, i32
  }
  func.func @transform_9(%arg0: i32) -> (i32, i32) {
    %c0_i32 = arith.constant 0 : i32
    %c0_i32_0 = arith.constant 0 : i32
    %c0_i32_1 = arith.constant 0 : i32
    return %c0_i32, %c0_i32_0 : i32, i32
  }
  func.func @transform_10(%arg0: i32) -> (i32, i32) {
    %c0_i32 = arith.constant 0 : i32
    %c0_i32_0 = arith.constant 0 : i32
    %c0_i32_1 = arith.constant 0 : i32
    return %c0_i32, %c0_i32_0 : i32, i32
  }
  func.func @transform_11(%arg0: i32) -> (i32, i32) {
    %c0_i32 = arith.constant 0 : i32
    %c0_i32_0 = arith.constant 0 : i32
    %c0_i32_1 = arith.constant 0 : i32
    return %c0_i32, %c0_i32_0 : i32, i32
  }
  func.func @transform_12(%arg0: i32) -> (i32, i32) {
    %c0_i32 = arith.constant 0 : i32
    %c0_i32_0 = arith.constant 0 : i32
    return %arg0, %c0_i32 : i32, i32
  }
}

</mosaic_0001>

<bundles_post_ra>
// kernel: tpu_custom_call.1
= control target key start
LH: loop header
LB: loop body
LE: loop exit
PB: predicated region body
PF: predicated region fallthrough
CT: control target
= control target key end

     0   :  { %17 = vsyncpa [#allocation3], 0  ;;  %s999_s0 = inlined_call_operand.hbm [shape: bf16[8,32], index: 0, kind: input, shape index: {}]   ;;  %s1000_s1 = inlined_call_operand.hbm [shape: bf16[32,384], index: 1, kind: input, shape index: {}]   ;;  %s1001_s2 = inlined_call_operand.hbm [shape: bf16[128,128], index: 2, kind: input, shape index: {}]   ;;  %s1002_s3 = inlined_call_operand.hbm [shape: bf16[128,128], index: 3, kind: input, shape index: {}]   ;;  %s1003_s4 = inlined_call_operand.hbm [shape: bf16[128,128], index: 4, kind: input, shape index: {}]   ;;  %s1004_s5 = inlined_call_operand.vmem [shape: f32[1,128], index: 5, kind: input, shape index: {}]   ;;  %s1005_s6 = inlined_call_operand.vmem [shape: f32[1,128], index: 6, kind: input, shape index: {}]   ;;  %s1006_s7 = inlined_call_operand.vmem [shape: f32[1,128], index: 7, kind: input, shape index: {}]   ;;  %s1007_s8 = inlined_call_operand.vmem [shape: f32[1,128], index: 8, kind: input, shape index: {}]   ;;  %s1008_s9 = inlined_call_operand.vmem [shape: f32[1,128], index: 9, kind: input, shape index: {}]   ;;  %s1009_s10 = inlined_call_operand.vmem [shape: f32[1,128], index: 10, kind: input, shape index: {}]   ;;  %s1010_s11 = inlined_call_operand.vmem [shape: f32[1,128], index: 11, kind: input, shape index: {}]   ;;  %s1011_s12 = inlined_call_operand.hbm [shape: f32[8,128], index: 12, kind: output, shape index: {}]  }
   0x1   :  { %18 = vsyncpa [#allocation6], 0 }
   0x2   :  { %19 = vsyncpa [#allocation9], 0  ;;  %s36_s23 = sshll.u32 %s1000_s1, 4  ;;  %s37_s23 = int_to_ptr.hbm [resolvable:$true] %s36_s23 }
   0x3   :  { %20 = vsyncpa [#allocation4], 0  ;;  %s868_s24 = smov [#allocation5]   ;;  %s869_s26 = smov 192  }
   0x4   :  { %s38_s25 = sshll.u32 %s868_s24, 4  ;;  %s870_s27 = smov 12   ;;  %s39_s25 = int_to_ptr.vmem [resolvable:$true] %s38_s25 }
   0x5   :  { %44 = dma.hbm_to_vmem [thread:$0]  %s37_s23, 768, %s39_s25, [#allocation6], %s869_s26, %s869_s26, %s870_s27  }
   0x6   :  { %s62_s30 = sshll.u32 %s1002_s3, 4  ;;  %s871_s13 = smov [#allocation8]   ;;  %s63_s30 = int_to_ptr.hbm [resolvable:$true] %s62_s30 }
   0x7   :  { %s64_s14 = sshll.u32 %s871_s13, 4  ;;  %s26_s17 = sshll.u32 %s999_s0, 4  ;;  %s65_s14 = int_to_ptr.vmem [resolvable:$true] %s64_s14  ;;  %s27_s17 = int_to_ptr.hbm [resolvable:$true] %s26_s17 }
   0x8   :  { %s872_s1 = smov 64   ;;  %s873_s18 = smov 4  }
   0x9   :  { %70 = dma.hbm_to_vmem [thread:$0]  %s63_s30, 1024, %s65_s14, [#allocation9], %s872_s1, %s872_s1, %s873_s18  }
   0xa   :  { %s49_s21 = sshll.u32 %s1001_s2, 4  ;;  %s874_s22 = smov [#allocation2]   ;;  %s50_s21 = int_to_ptr.hbm [resolvable:$true] %s49_s21 }
   0xb   :  { %s28_s23 = sshll.u32 %s874_s22, 4  ;;  %s875_s3 = smov [#allocation7]   ;;  %s29_s23 = int_to_ptr.vmem [resolvable:$true] %s28_s23 }
   0xc   :  { %31 = dma.hbm_to_vmem [thread:$0]  %s27_s17, 64, %s29_s23, [#allocation3]  }
   0xd   :  { %s51_s24 = sshll.u32 %s875_s3, 4  ;;  %s75_s0 = sshll.u32 %s1003_s4, 4  ;;  %s52_s24 = int_to_ptr.vmem [resolvable:$true] %s51_s24  ;;  %s76_s0 = int_to_ptr.hbm [resolvable:$true] %s75_s0 }
   0xe   :  { %57 = dma.hbm_to_vmem [thread:$0]  %s50_s21, 1024, %s52_s24, [#allocation6], %s872_s1, %s872_s1, %s873_s18  }
   0xf   :  { %s876_s27 = smov [#allocation10]  }
  0x10   :  { %s77_s28 = sshll.u32 %s876_s27, 4  ;;  %s78_s28 = int_to_ptr.vmem [resolvable:$true] %s77_s28 }
  0x11   :  { %83 = dma.hbm_to_vmem [thread:$0]  %s76_s0, 1024, %s78_s28, [#allocation9], %s872_s1, %s872_s1, %s873_s18  }
  0x12   :  { %860 = dma.done.wait [#allocation3], 64  }
  0x13   :  { %861 = vsyncadd [#allocation3], 4294967232 }
  0x14   :  { %862 = dma.done.wait [#allocation6], 1792  }
  0x15   :  { %863 = vsyncadd [#allocation6], 4294965504 }
  0x16   :  { %864 = dma.done.wait [#allocation9], 2048  }
  0x17   :  { %865 = vsyncadd [#allocation9], 4294965248  ;;  %v556_v0 = vld [vmem:[#allocation5 + $0x18] sm:$0xf]  ;;  %v669_v1 = vld [vmem:[#allocation5 + $0x20] sm:$0xf0] }
  0x18   :  { %v544_v2 = vld [vmem:[#allocation5] sm:$0xf]  ;;  %v557_v3 = vor.u32 %v669_v1, %v556_v0  ;;  %v666_v4 = vld [vmem:[#allocation5 + $0x8] sm:$0xf0]  ;;  %v958_v6 = vld [vmem:[#allocation2] sm:$0xf] }
  0x19   :  { %v545_v5 = vor.u32 %v666_v4, %v544_v2  ;;  %vm160_vm0 = vcmask 261120   ;;  %v705_v7 = vld [vmem:[%s1004_s5] ss:$0 sm:$0xff]  ;;  %v678_v12 = vld [vmem:[#allocation7 + $0x38] sm:$0xff]  ;;  %v677_v14 = vld [vmem:[#allocation7 + $0x30] sm:$0xff]  ;;  %s877_s1 = smov [#allocation11]  }
  0x1a   :  { %170 = vmatpush.bf16.msra.mxu2 %v557_v3  ;;  %v694_v13 = vld [vmem:[#allocation10 + $0x38] sm:$0xff]  ;;  %308 = vmatpush.bf16.msra.mxu3 %v678_v12  ;;  %v693_v15 = vld [vmem:[#allocation10 + $0x30] sm:$0xff]  ;;  %v676_v16 = vld [vmem:[#allocation7 + $0x28] sm:$0xff]  ;;  %s528_s18 = sshll.u32 %s877_s1, 4  ;;  %s530_s20 = sshll.u32 %s1011_s12, 4  ;;  %s529_s18 = int_to_ptr.vmem [resolvable:$true] %s528_s18  ;;  %s531_s20 = int_to_ptr.hbm [resolvable:$true] %s530_s20 }
  0x1b   :  { %442 = vmatpush.bf16.msra.mxu0 %v694_v13  ;;  %v692_v17 = vld [vmem:[#allocation10 + $0x28] sm:$0xff]  ;;  %v675_v18 = vld [vmem:[#allocation7 + $0x20] sm:$0xff]  ;;  %v674_v20 = vld [vmem:[#allocation7 + $0x18] sm:$0xff] }
  0x1c   :  { %v691_v19 = vld [vmem:[#allocation10 + $0x20] sm:$0xff]  ;;  %v690_v21 = vld [vmem:[#allocation10 + $0x18] sm:$0xff]  ;;  %v668_v22 = vld [vmem:[#allocation5 + $0x1c] sm:$0xf] }
  0x1d   :  { %v558_v23 = vld [vmem:[#allocation5 + $0x24] sm:$0xf0]  ;;  %v673_v25 = vld [vmem:[#allocation7 + $0x10] sm:$0xff]  ;;  %v546_v29 = vld [vmem:[#allocation5 + $0xc] sm:$0xf0] }
  0x1e   :  { %171 = vmatpush.bf16.msra.mxu2 %v545_v5  ;;  %309 = vmatpush.bf16.msra.mxu3 %v677_v14  ;;  %v689_v26 = vld [vmem:[#allocation10 + $0x10] sm:$0xff]  ;;  %v561_v27 = vor.u32 %v668_v22, %v558_v23  ;;  %v672_v31 = vld [vmem:[#allocation7 + $0x8] sm:$0xff]  ;;  %v671_v35 = vld [vmem:[#allocation7] sm:$0xff] }
  0x1f   :  { %443 = vmatpush.bf16.msra.mxu0 %v693_v15  ;;  %v665_v28 = vld [vmem:[#allocation5 + $0x4] sm:$0xf]  ;;  %v688_v32 = vld [vmem:[#allocation10 + $0x8] sm:$0xff]  ;;  %v687_v36 = vld [vmem:[#allocation10] sm:$0xff] }
  0x20   :  { %183 = vmatpush.bf16.msra.mxu1 %v561_v27  ;;  %v549_v30 = vor.u32 %v665_v28, %v546_v29  ;;  %v706_v47 = vld [vmem:[%s1005_s6] ss:$0 sm:$0xff]  ;;  %v686_v4 = vld [vmem:[#allocation8 + $0x38] sm:$0xff]  ;;  %v685_v5 = vld [vmem:[#allocation8 + $0x30] sm:$0xff] }
  0x21   :  { %566 = vmatmul.msk.bf16.vlgmr.msra.gmra.mxu2 %vm160_vm0, %v958_v6  ;;  %v707_v51 = vld [vmem:[%s1006_s7] ss:$0 sm:$0xff]  ;;  %v552_v12 = vld [vmem:[#allocation5 + $0x8] sm:$0xf]  ;;  %v667_v13 = vld [vmem:[#allocation5 + $0x10] sm:$0xf0] }
  0x22   :  { %310 = vmatpush.bf16.msra.mxu3 %v676_v16  ;;  %v708_v61 = vld [vmem:[%s1007_s8] ss:$0 sm:$0xff]  ;;  %v553_v14 = vor.u32 %v667_v13, %v552_v12  ;;  %v682_v15 = vld [vmem:[#allocation8 + $0x18] sm:$0xff] }
  0x23   :  { %444 = vmatpush.bf16.msra.mxu0 %v692_v17  ;;  %v681_v17 = vld [vmem:[#allocation8 + $0x10] sm:$0xff] }
  0x24   :  { %184 = vmatpush.bf16.msra.mxu1 %v549_v30 }
  0x26   :  { %311 = vmatpush.bf16.msra.mxu3 %v675_v18  ;;  %v680_v18 = vld [vmem:[#allocation8 + $0x8] sm:$0xff] }
  0x27   :  { %445 = vmatpush.bf16.msra.mxu0 %v691_v19  ;;  %567 = vmatmul.msk.bf16.vlgmr.msra.gmra.mxu1 %vm160_vm0, %v958_v6 }
  0x28   :  { %503 = vmatpush.bf16.msrb.mxu1 %v686_v4 }
  0x2a   :  { %312 = vmatpush.bf16.msra.mxu3 %v674_v20 }
  0x2b   :  { %446 = vmatpush.bf16.msra.mxu0 %v690_v21  ;;  %v679_v21 = vld [vmem:[#allocation8] sm:$0xff] }
  0x2c   :  { %504 = vmatpush.bf16.msrb.mxu1 %v685_v5 }
  0x2e   :  { %313 = vmatpush.bf16.msra.mxu3 %v673_v25 }
  0x2f   :  { %447 = vmatpush.bf16.msra.mxu0 %v689_v26 }
  0x32   :  { %314 = vmatpush.bf16.msra.mxu3 %v672_v31 }
  0x33   :  { %448 = vmatpush.bf16.msra.mxu0 %v688_v32 }
  0x36   :  { %315 = vmatpush.bf16.msra.mxu3 %v671_v35  ;;  %v710_v35 = vld [vmem:[%s1009_s10] ss:$0 sm:$0xff] }
  0x37   :  { %449 = vmatpush.bf16.msra.mxu0 %v687_v36 }
  0xa4   :  { %v173_v8 = vpop.f32.mrf.mxu2  ;;  %v186_v58 = vpop.f32.mrf.mxu1 }
  0xa5   :  { %v965_v9 = vadd.f32 %v705_v7, %v173_v8  ;;  %v684_v7 = vld [vmem:[#allocation8 + $0x28] sm:$0xff]  ;;  %v564_v8 = vld [vmem:[#allocation5 + $0x20] sm:$0xf] }
  0xa6   :  { %505 = vmatpush.bf16.msrb.mxu1 %v684_v7 }
  0xa7   :  { %210 = vadd.xlane.f32.xlu0 %v965_v9  ;;  %v212_v11 = vmul.f32 %v965_v9, %v965_v9 }
  0xac   :  { %v175_v10 = vpop.f32.mrf.mxu2  ;;  %v188_v59 = vpop.f32.mrf.mxu1 }
  0xaf   :  { %213 = vadd.xlane.f32.xlu0 %v212_v11  ;;  %v683_v11 = vld [vmem:[#allocation8 + $0x20] sm:$0xff] }
  0xb0   :  { %506 = vmatpush.bf16.msrb.mxu1 %v683_v11 }
  0xb4   :  { %507 = vmatpush.bf16.msrb.mxu1 %v682_v15 }
  0xb8   :  { %508 = vmatpush.bf16.msrb.mxu1 %v681_v17 }
  0xbc   :  { %509 = vmatpush.bf16.msrb.mxu1 %v680_v18 }
  0xc0   :  { %510 = vmatpush.bf16.msrb.mxu1 %v679_v21 }
 0x11a   :  { %v211_v24 = vpop.xlane.xlu0 %210 }
 0x11b   :  { %v215_v33 = vmul.f32 0.015625, %v211_v24 }
 0x11d   :  { %v217_v37 = vmul.f32 %v215_v33, %v215_v33 }
 0x122   :  { %v214_v34 = vpop.xlane.xlu0 %213 }
 0x123   :  { %v216_v38 = vmul.f32 0.015625, %v214_v34 }
 0x125   :  { %v218_v39 = vsub.f32 %v216_v38, %v217_v37 }
 0x127   :  { %v219_v40 = vmax.f32 %v218_v39, 0.0 }
 0x129   :  { %v220_v41 = vadd.f32 1e-05, %v219_v40 }
 0x12b   :  { %712 = vrsqrt.f32 %v220_v41  ;;  %vm227_vm2 = vweird.f32 %v220_v41 }
 0x131   :  { %v713_v42 = vpop.eup %712 }
 0x132   :  { %v222_v43 = vmul.f32 %v713_v42, %v220_v41  ;;  %vm228_vm1 = vweird.f32 %v713_v42 }
 0x133   :  { %vm229_vm3 = vmor %vm227_vm2, %vm228_vm1 }
 0x134   :  { %v223_v44 = vmul.f32 %v713_v42, %v222_v43 }
 0x136   :  { %v224_v45 = vmul.f32 0.5, %v223_v44 }
 0x138   :  { %v225_v46 = vsub.f32 1.5, %v224_v45 }
 0x13a   :  { %v226_v48 = vmul.f32 %v713_v42, %v225_v46  ;;  %v711_v46 = vld [vmem:[%s1010_s11] ss:$0 sm:$0xff] }
 0x13c   :  { %v230_v49 = vsel %vm229_vm3, %v713_v42, %v226_v48 }
 0x13d   :  { %v234_v50 = vmul.f32 %v706_v47, %v230_v49 }
 0x13f   :  { %v236_v52 = vmul.f32 %v234_v50, %v215_v33  ;;  %v235_v53 = vmul.f32 %v234_v50, %v965_v9  ;;  %v670_v9 = vld [vmem:[#allocation5 + $0x28] sm:$0xf0] }
 0x140   :  { %v565_v10 = vor.u32 %v670_v9, %v564_v8 }
 0x141   :  { %v240_v54 = vsub.f32 %v707_v51, %v236_v52 }
 0x142   :  { %196 = vmatpush.bf16.msrb.mxu2 %v565_v10 }
 0x143   :  { %v241_v55 = vadd.f32 %v240_v54, %v235_v53 }
 0x145   :  { %v242_v56 = vmax.f32 %v241_v55, 0.0 }
 0x146   :  { %197 = vmatpush.bf16.msrb.mxu2 %v553_v14 }
 0x147   :  { %v243_v57 = vpack.c.bf16 %v242_v56, %v242_v56 }
 0x149   :  { %316 = vmatmul.bf16.vlgmr.msra.gmra.mxu3 %v243_v57  ;;  %450 = vmatmul.bf16.vlgmr.msra.gmra.mxu0 %v243_v57 }
 0x14a   :  { %568 = vmatmul.msk.bf16.vlgmr.msrb.gmra.mxu2 %vm160_vm0, %v958_v6  ;;  %v709_v6 = vld [vmem:[%s1008_s9] ss:$0 sm:$0xff] }
 0x1c6   :  { %v979_v60 = vpop.f32.mrf.mxu0 }
 0x1cc   :  { %v317_v62 = vpop.f32.mrf.mxu3 }
 0x1cd   :  { %v318_v63 = vadd.f32 %v317_v62, %v186_v58  ;;  %v199_v42 = vpop.f32.mrf.mxu2 }
 0x1ce   :  { %v453_v0 = vpop.f32.mrf.mxu0 }
 0x1cf   :  { %v325_v1 = vadd.f32 %v708_v61, %v318_v63 }
 0x1d1   :  { %328 = vadd.xlane.f32.xlu1 %v325_v1  ;;  %v330_v3 = vmul.f32 %v325_v1, %v325_v1 }
 0x1d4   :  { %v319_v2 = vpop.f32.mrf.mxu3 }
 0x1d5   :  { %v201_v43 = vpop.f32.mrf.mxu2 }
 0x1d9   :  { %331 = vadd.xlane.f32.xlu1 %v330_v3 }
 0x244   :  { %v329_v16 = vpop.xlane.xlu1 %328 }
 0x245   :  { %v333_v19 = vmul.f32 0.015625, %v329_v16 }
 0x247   :  { %v335_v22 = vmul.f32 %v333_v19, %v333_v19 }
 0x24c   :  { %v332_v20 = vpop.xlane.xlu1 %331 }
 0x24d   :  { %v334_v23 = vmul.f32 0.015625, %v332_v20 }
 0x24f   :  { %v336_v24 = vsub.f32 %v334_v23, %v335_v22 }
 0x251   :  { %v337_v25 = vmax.f32 %v336_v24, 0.0 }
 0x253   :  { %v338_v26 = vadd.f32 1e-05, %v337_v25 }
 0x255   :  { %714 = vrsqrt.f32 %v338_v26  ;;  %vm345_vm5 = vweird.f32 %v338_v26 }
 0x25b   :  { %v715_v27 = vpop.eup %714 }
 0x25c   :  { %v340_v28 = vmul.f32 %v715_v27, %v338_v26  ;;  %vm346_vm4 = vweird.f32 %v715_v27 }
 0x25d   :  { %vm347_vm6 = vmor %vm345_vm5, %vm346_vm4 }
 0x25e   :  { %v341_v29 = vmul.f32 %v715_v27, %v340_v28 }
 0x260   :  { %v342_v30 = vmul.f32 0.5, %v341_v29 }
 0x262   :  { %v343_v31 = vsub.f32 1.5, %v342_v30 }
 0x264   :  { %v344_v32 = vmul.f32 %v715_v27, %v343_v31 }
 0x266   :  { %v348_v33 = vsel %vm347_vm6, %v715_v27, %v344_v32 }
 0x267   :  { %v352_v34 = vmul.f32 %v709_v6, %v348_v33 }
 0x269   :  { %v354_v36 = vmul.f32 %v352_v34, %v333_v19  ;;  %v353_v37 = vmul.f32 %v352_v34, %v325_v1 }
 0x26b   :  { %v358_v38 = vsub.f32 %v710_v35, %v354_v36 }
 0x26d   :  { %v359_v39 = vadd.f32 %v358_v38, %v353_v37 }
 0x26f   :  { %v360_v40 = vmax.f32 %v359_v39, 0.0 }
 0x271   :  { %v361_v41 = vpack.c.bf16 %v360_v40, %v360_v40 }
 0x273   :  { %511 = vmatmul.bf16.vlgmr.msrb.gmra.mxu1 %v361_v41 }
 0x2f0   :  { %v512_v44 = vpop.f32.mrf.mxu1 }
 0x2f1   :  { %v513_v45 = vadd.f32 %v512_v44, %v979_v60 }
 0x2f3   :  { %v516_v47 = vadd.f32 %v513_v45, %v199_v42 }
 0x2f5   :  { %v521_v48 = vadd.f32 %v711_v46, %v516_v47 }
 0x2f7   :  { %522 = vst [vmem:[#allocation11] sm:$0xff] %v521_v48 }
 0x2f8   :  { %v514_v49 = vpop.f32.mrf.mxu1  ;;  %533 = dma.vmem_to_hbm [thread:$0]  %s529_s18, 128, %s531_s20, [#allocation4]  }
 0x2f9   :  { %866 = dma.done.wait [#allocation4], 128  }
 0x2fa   :  { %867 = vsyncadd [#allocation4], 4294967168 }
 0x2fb   :  { %538 = vsyncpa [#allocation3], 1 }
 0x2fc   :  { %539 = vsyncpa [#allocation6], 1 }
 0x2fd   :  { %540 = vsyncpa [#allocation9], 1 }
 0x2fe   :  { %541 = vsyncpa [#allocation4], 1 }

</bundles_post_ra>
